<compile_context>
chip_gen: v7x
topology: tpu7x:2x2x1
jax: 0.10.0
libtpu: 0.0.40
codegen_flags: <defaults>
</compile_context>

<pallas_src>
import functools
import math

import jax
import jax.numpy as jnp
from jax.experimental import pallas as pl
from jax.experimental.pallas import tpu as pltpu


# Explicit scoped-VMEM budget: above the 32 MiB default, below v7x's 64 MiB
# physical VMEM so double-buffering stays viable on every generation.
_VMEM_LIMIT_BYTES = 48 * 1024 * 1024


def _pick_tile(dim, cap, granule=128):
    """Largest tile <= cap that evenly divides dim, preferring multiples of
    `granule` (128 for lane dims); falls back to the largest multiple-of-8
    divisor, and only then to the full dimension."""
    if dim <= cap:
        return dim
    fallback = None
    for t in range(cap, 0, -1):
        if dim % t:
            continue
        if t % granule == 0:
            return t
        if fallback is None and t % 8 == 0:
            fallback = t
    return fallback if fallback is not None else dim


# --------------------------------------------------------------------------
# Kernel 1: tiled batched linear   out[p] = x[p or 0] @ w[p] + b[p]
# --------------------------------------------------------------------------
def _linear_kernel(x_ref, w_ref, b_ref, o_ref, acc_ref):
    @pl.when(pl.program_id(3) == 0)
    def _init():
        acc_ref[...] = jnp.zeros_like(acc_ref)

    acc_ref[...] += jnp.dot(
        x_ref[0], w_ref[0], preferred_element_type=jnp.float32
    )

    @pl.when(pl.program_id(3) == pl.num_programs(3) - 1)
    def _store():
        o_ref[0] = (acc_ref[...] + b_ref[0]).astype(o_ref.dtype)


def batched_linear(x, w, b, *, out_dtype=jnp.float32, shared_x=False,
                   tm_cap=256, tn_cap=256, tk_cap=512):
    """x: (1 or P, M, K) bf16, w: (P, K, N) bf16, b: (P, 1, N) f32 -> (P, M, N).

    With shared_x=True every P step reads the same x block (x has leading dim
    1), avoiding the jnp.stack HBM copy for the self-attention case.
    """
    # TODO(synk): raise tm/tn/tk caps to 512 on v5e/v6e (128 MiB VMEM); keep
    # the tighter defaults for v7x's 64 MiB.
    P = w.shape[0]
    M, K = x.shape[1], x.shape[2]
    N = w.shape[-1]
    tm = _pick_tile(M, tm_cap)
    tn = _pick_tile(N, tn_cap)
    tk = _pick_tile(K, tk_cap)
    grid = (P, M // tm, N // tn, K // tk)
    x_map = (lambda p, i, j, k: (0, i, k)) if shared_x else \
            (lambda p, i, j, k: (p, i, k))
    return pl.pallas_call(
        _linear_kernel,
        out_shape=jax.ShapeDtypeStruct((P, M, N), out_dtype),
        grid=grid,
        in_specs=[
            pl.BlockSpec((1, tm, tk), x_map),
            pl.BlockSpec((1, tk, tn), lambda p, i, j, k: (p, k, j)),
            pl.BlockSpec((1, 1, tn), lambda p, i, j, k: (p, 0, j)),
        ],
        out_specs=pl.BlockSpec((1, tm, tn), lambda p, i, j, k: (p, i, j)),
        scratch_shapes=[pltpu.VMEM((tm, tn), jnp.float32)],
        compiler_params=pltpu.CompilerParams(
            dimension_semantics=("parallel", "parallel", "parallel", "arbitrary"),
            vmem_limit_bytes=_VMEM_LIMIT_BYTES,
        ),
    )(x, w, b)


# --------------------------------------------------------------------------
# Kernel 2: flash-style attention (default path).
#   grid = (B, Sq_tiles, Sk_tiles), Sk innermost & "arbitrary".
#   inputs/outputs stay in the lane-dense (B, S, D) layout; heads are split by
#   an in-kernel reshape so no HBM-level split/merge transposes are needed.
# --------------------------------------------------------------------------
def _flash_attn_kernel(q_ref, k_ref, v_ref, mask_ref, o_ref,
                       m_sc, l_sc, acc_sc, *, num_heads):
    kv = pl.program_id(2)

    @pl.when(kv == 0)
    def _init():
        m_sc[...] = jnp.full_like(m_sc, -jnp.inf)
        l_sc[...] = jnp.zeros_like(l_sc)
        acc_sc[...] = jnp.zeros_like(acc_sc)

    tq, D = q_ref.shape[2], q_ref.shape[3]
    tk = k_ref.shape[2]
    depth = D // num_heads

    q3 = q_ref[0, 0].reshape(tq, num_heads, depth)     # bf16, scale pre-folded
    k3 = k_ref[0, 0].reshape(tk, num_heads, depth)
    v3 = v_ref[0, 0].reshape(tk, num_heads, depth)

    # QK^T per head, contraction over the last dim (no HBM transpose).
    s = jnp.einsum("qhd,khd->hqk", q3, k3, preferred_element_type=jnp.float32)
    s = s + mask_ref[...][None, :, :]                  # pre-scaled -10000 mask

    m_prev = m_sc[...]
    m_new = jnp.maximum(m_prev, jnp.max(s, axis=-1, keepdims=True))
    alpha = jnp.exp(m_prev - m_new)
    p = jnp.exp(s - m_new)
    l_sc[...] = alpha * l_sc[...] + jnp.sum(p, axis=-1, keepdims=True)
    acc_sc[...] = alpha * acc_sc[...] + jnp.einsum(
        "hqk,khd->hqd", p.astype(v3.dtype), v3,
        preferred_element_type=jnp.float32)
    m_sc[...] = m_new

    @pl.when(kv == pl.num_programs(2) - 1)
    def _finalize():
        ctx = acc_sc[...] * pl.reciprocal(l_sc[...], approx=True)   # (H,tq,depth)
        # Merge heads in-VMEM once per q tile -> lane-dense (tq, D) store.
        o_ref[0] = ctx.transpose(1, 0, 2).reshape(tq, D).astype(o_ref.dtype)


def flash_attention(qkv, neg_mask, num_heads, *, tq_cap=256, tk_cap=256):
    """qkv: (3, B, S, D) bf16 (q already scaled), neg_mask: (S, S) f32.

    Returns the context as (B, S, D) bf16 with heads merged along D.
    """
    _, B, S, D = qkv.shape
    depth = D // num_heads
    tq = _pick_tile(S, tq_cap)
    tk = _pick_tile(S, tk_cap)
    grid = (B, S // tq, S // tk)
    return pl.pallas_call(
        functools.partial(_flash_attn_kernel, num_heads=num_heads),
        out_shape=jax.ShapeDtypeStruct((B, S, D), jnp.bfloat16),
        grid=grid,
        in_specs=[
            pl.BlockSpec((1, 1, tq, D), lambda b, qi, ki: (0, b, qi, 0)),
            pl.BlockSpec((1, 1, tk, D), lambda b, qi, ki: (1, b, ki, 0)),
            pl.BlockSpec((1, 1, tk, D), lambda b, qi, ki: (2, b, ki, 0)),
            pl.BlockSpec((tq, tk), lambda b, qi, ki: (qi, ki)),
        ],
        out_specs=pl.BlockSpec((1, tq, D), lambda b, qi, ki: (b, qi, 0)),
        scratch_shapes=[
            pltpu.VMEM((num_heads, tq, 1), jnp.float32),     # running max
            pltpu.VMEM((num_heads, tq, 1), jnp.float32),     # running denom
            pltpu.VMEM((num_heads, tq, depth), jnp.float32),  # accumulator
        ],
        compiler_params=pltpu.CompilerParams(
            dimension_semantics=("parallel", "parallel", "arbitrary"),
            vmem_limit_bytes=_VMEM_LIMIT_BYTES,
        ),
    )(qkv, qkv, qkv, neg_mask)


# --------------------------------------------------------------------------
# Kernel 3: monolithic fallback, only used when output_attentions=True.
#   Materializes the (H, S, S) probabilities; exact reciprocal on this path.
# --------------------------------------------------------------------------
def _attn_full_kernel(q_ref, k_ref, v_ref, mask_ref, o_ref, attn_ref,
                      *, num_heads):
    S, D = q_ref.shape[2], q_ref.shape[3]
    depth = D // num_heads
    q3 = q_ref[0, 0].reshape(S, num_heads, depth)
    k3 = k_ref[0, 0].reshape(S, num_heads, depth)
    v3 = v_ref[0, 0].reshape(S, num_heads, depth)

    s = jnp.einsum("qhd,khd->hqk", q3, k3, preferred_element_type=jnp.float32)
    s = s + mask_ref[...][None, :, :]
    m = jnp.max(s, axis=-1, keepdims=True)
    e = jnp.exp(s - m)
    p = e / jnp.sum(e, axis=-1, keepdims=True)      # exact: p is a user output
    attn_ref[0] = p

    ctx = jnp.einsum("hqk,khd->hqd", p.astype(v3.dtype), v3,
                     preferred_element_type=jnp.float32)
    o_ref[0] = ctx.transpose(1, 0, 2).reshape(S, D).astype(o_ref.dtype)


def attention_with_probs(qkv, neg_mask, num_heads):
    # TODO(synk): this fallback holds H*S^2 f32 in VMEM; for long sequences the
    # probabilities should be reconstructed from the flash kernel's saved m/l.
    _, B, S, D = qkv.shape
    outs = pl.pallas_call(
        functools.partial(_attn_full_kernel, num_heads=num_heads),
        out_shape=(jax.ShapeDtypeStruct((B, S, D), jnp.bfloat16),
                   jax.ShapeDtypeStruct((B, num_heads, S, S), jnp.float32)),
        grid=(B,),
        in_specs=[
            pl.BlockSpec((1, 1, S, D), lambda b: (0, b, 0, 0)),
            pl.BlockSpec((1, 1, S, D), lambda b: (1, b, 0, 0)),
            pl.BlockSpec((1, 1, S, D), lambda b: (2, b, 0, 0)),
            pl.BlockSpec((S, S), lambda b: (0, 0)),
        ],
        out_specs=(pl.BlockSpec((1, S, D), lambda b: (b, 0, 0)),
                   pl.BlockSpec((1, num_heads, S, S), lambda b: (b, 0, 0, 0))),
        compiler_params=pltpu.CompilerParams(
            dimension_semantics=("parallel",),
            vmem_limit_bytes=_VMEM_LIMIT_BYTES,
        ),
    )(qkv, qkv, qkv, neg_mask)
    return outs[0], outs[1]


# --------------------------------------------------------------------------
# Module forward (glue in plain JAX, all matmuls/softmax in Pallas kernels)
# --------------------------------------------------------------------------
def init_params(key, d_model_size):
    ks = jax.random.split(key, 8)
    bound = 1.0 / math.sqrt(d_model_size)

    def lin(kw, kb):
        w = jax.random.uniform(kw, (d_model_size, d_model_size), jnp.float32,
                               -bound, bound)
        b = jax.random.uniform(kb, (1, d_model_size), jnp.float32, -bound, bound)
        return w, b

    return {"Wq": lin(ks[0], ks[1]), "Wk": lin(ks[2], ks[3]),
            "Wv": lin(ks[4], ks[5]), "dense": lin(ks[6], ks[7])}


def multi_head_attention(params, v, k, q, mask, num_heads,
                         output_attentions=False,
                         layer_past=None, attention_mask=None, head_mask=None):
    # TODO(synk): layer_past / attention_mask / head_mask are None in this
    # synthetic setup and are not wired into the kernels.
    B, S, D = q.shape
    depth = D // num_heads
    scale = 1.0 / math.sqrt(depth)

    wq, bq = params["Wq"]
    wk, bk = params["Wk"]
    wv, bv = params["Wv"]
    wd, bd = params["dense"]

    # Fused Q/K/V projection (bf16 MXU operands, f32 accumulation, bf16 output).
    # The 1/sqrt(depth) score scale is folded into Wq / bq.
    w_stacked = jnp.stack([wq * scale, wk, wv]).astype(jnp.bfloat16)  # (3,D,D)
    b_stacked = jnp.stack([bq * scale, bk, bv])                       # (3,1,D)
    if (q is k) and (q is v):
        # True self-attention: every projection reads the same x block.
        x = q.reshape(1, B * S, D).astype(jnp.bfloat16)
        shared_x = True
    else:
        x = jnp.stack([q, k, v]).reshape(3, B * S, D).astype(jnp.bfloat16)
        shared_x = False
    qkv = batched_linear(x, w_stacked, b_stacked,
                         out_dtype=jnp.bfloat16, shared_x=shared_x)
    qkv = qkv.reshape(3, B, S, D)          # bf16, heads along the last dim

    # `present` keeps the module's (2, B, H, S, depth) float32 contract.
    # TODO(synk): keep the KV cache in bf16 if downstream consumers accept it.
    present = (qkv[1:3].reshape(2, B, S, num_heads, depth)
               .transpose(0, 1, 3, 2, 4).astype(jnp.float32))

    neg_mask = (mask * (-10000.0)).astype(jnp.float32)   # pre-scaled once

    if output_attentions:
        ctx, attn = attention_with_probs(qkv, neg_mask, num_heads)
    else:
        ctx = flash_attention(qkv, neg_mask, num_heads)
        attn = None

    # ctx is already (B, S, D) with heads merged -> no transpose before dense.
    out = batched_linear(ctx.reshape(1, B * S, D),
                         wd[None].astype(jnp.bfloat16), bd[None],
                         out_dtype=jnp.float32)[0].reshape(B, S, D)

    outputs = (out, present)
    if output_attentions:
        outputs = outputs + (attn,)
    return outputs


# --------------------------------------------------------------------------
# Pure-JAX reference mirroring the PyTorch module.  Matmul operands are
# rounded to bf16 (f32 accumulation) to match the kernel's MXU dtype.
# --------------------------------------------------------------------------
def reference(params, v, k, q, mask, num_heads):
    B, S, D = q.shape
    depth = D // num_heads
    bf = lambda t: t.astype(jnp.bfloat16).astype(jnp.float32)

    def project(x, wb):
        w, b = wb
        return bf(x) @ bf(w) + b

    def split_heads(x):
        return x.reshape(B, S, num_heads, depth).transpose(0, 2, 1, 3)

    qh = split_heads(project(q, params["Wq"]))
    kh = split_heads(project(k, params["Wk"]))
    vh = split_heads(project(v, params["Wv"]))
    scores = jnp.einsum("bhqd,bhkd->bhqk", bf(qh), bf(kh)) / math.sqrt(depth)
    scores = scores + mask * (-10000.0)
    p = jax.nn.softmax(scores, axis=-1)
    ctx = jnp.einsum("bhqk,bhkd->bhqd", bf(p), bf(vh))
    ctx = ctx.transpose(0, 2, 1, 3).reshape(B, S, D)
    out = bf(ctx) @ bf(params["dense"][0]) + params["dense"][1]
    return out


if __name__ == "__main__":
    B, S, D, H = 2, 8, 32, 4

    key = jax.random.PRNGKey(0)
    k_param, k_q, k_k, k_v = jax.random.split(key, 4)

    params = init_params(k_param, D)
    q_in = jax.random.normal(k_q, (B, S, D), jnp.float32)
    k_in = jax.random.normal(k_k, (B, S, D), jnp.float32)
    v_in = jax.random.normal(k_v, (B, S, D), jnp.float32)
    # CTRL causal mask: 1 above the diagonal (future positions masked).
    mask = jnp.triu(jnp.ones((S, S), jnp.float32), 1)

    out, present = multi_head_attention(params, v_in, k_in, q_in, mask, H)
    out = jax.block_until_ready(out)
    present = jax.block_until_ready(present)

    ref_out = reference(params, v_in, k_in, q_in, mask, H)
    assert out.shape == (B, S, D)
    assert present.shape == (2, B, H, S, D // H)
    assert jnp.allclose(out, ref_out, atol=3e-2, rtol=3e-2), float(
        jnp.max(jnp.abs(out - ref_out)))

    # Shared-input (true self-attention) path: q is k is v.
    out_sa, _ = multi_head_attention(params, q_in, q_in, q_in, mask, H)
    out_sa = jax.block_until_ready(out_sa)
    ref_sa = reference(params, q_in, q_in, q_in, mask, H)
    assert jnp.allclose(out_sa, ref_sa, atol=3e-2, rtol=3e-2)

    # Exercise the optional attention-probabilities (fallback kernel) path.
    out2, present2, attn = multi_head_attention(
        params, v_in, k_in, q_in, mask, H, output_attentions=True)
    attn = jax.block_until_ready(attn)
    assert attn.shape == (B, H, S, S)
    assert jnp.allclose(jnp.sum(attn, axis=-1), 1.0, atol=2e-2)
    future = jnp.triu(jnp.ones((S, S), jnp.bool_), 1)
    assert float(jnp.max(jnp.where(future, attn, 0.0))) < 1e-4
    assert jnp.allclose(out2, ref_out, atol=3e-2, rtol=3e-2)
    assert jnp.allclose(out2, out, atol=3e-2)

    print("KERNEL_OK")
</pallas_src>

<mosaic_0001>
module attributes {stable_mosaic.version = 11 : i64} {
  func.func @_linear_kernel(%arg0: i32, %arg1: i32, %arg2: i32, %arg3: i32, %arg4: memref<1x16x32xbf16, #tpu.memory_space<vmem>>, %arg5: memref<1x32x32xbf16, #tpu.memory_space<vmem>>, %arg6: memref<1x1x32xf32, #tpu.memory_space<vmem>>, %arg7: memref<1x16x32xbf16, #tpu.memory_space<vmem>>, %arg8: memref<16x32xf32, #tpu.memory_space<vmem>>) attributes {dimension_semantics = [#tpu.dimension_semantics<parallel>, #tpu.dimension_semantics<parallel>, #tpu.dimension_semantics<parallel>, #tpu.dimension_semantics<arbitrary>], iteration_bounds = array<i64: 3, 1, 1, 1>, scalar_prefetch = 0 : i64, scratch_operands = 1 : i64, tpu.core_type = #tpu.core_type<tc>, window_params = [{transform_indices = @transform_0, window_bounds = array<i64: 1, 16, 32>}, {transform_indices = @transform_1, window_bounds = array<i64: 1, 32, 32>}, {transform_indices = @transform_2, window_bounds = array<i64: 1, 1, 32>}, {transform_indices = @transform_3, window_bounds = array<i64: 1, 16, 32>}]} {
    %c0_i32 = arith.constant 0 : i32
    %0 = arith.cmpi eq, %arg3, %c0_i32 : i32
    %1 = arith.extui %0 : i1 to i32
    %c0_i32_0 = arith.constant 0 : i32
    %2 = arith.cmpi ne, %1, %c0_i32_0 : i32
    scf.if %2 {
      %cst_12 = arith.constant 0.000000e+00 : f32
      %14 = vector.broadcast %cst_12 : f32 to vector<16x32xf32>
      %c0_13 = arith.constant 0 : index
      %c0_14 = arith.constant 0 : index
      %15 = vector.load %arg8[%c0_13, %c0_14] : memref<16x32xf32, #tpu.memory_space<vmem>>, vector<16x32xf32>
      tpu.vector_store %arg8[%c0_13, %c0_14], %14 {strides = array<i32>} : memref<16x32xf32, #tpu.memory_space<vmem>>, vector<16x32xf32>,
    } else {
    }
    %c0 = arith.constant 0 : index
    %c0_1 = arith.constant 0 : index
    %3 = vector.load %arg8[%c0, %c0_1] : memref<16x32xf32, #tpu.memory_space<vmem>>, vector<16x32xf32>
    %c0_2 = arith.constant 0 : index
    %c0_3 = arith.constant 0 : index
    %c0_4 = arith.constant 0 : index
    %4 = vector.load %arg4[%c0_2, %c0_3, %c0_4] : memref<1x16x32xbf16, #tpu.memory_space<vmem>>, vector<1x16x32xbf16>
    %5 = vector.shape_cast %4 : vector<1x16x32xbf16> to vector<16x32xbf16>
    %c0_5 = arith.constant 0 : index
    %c0_6 = arith.constant 0 : index
    %c0_7 = arith.constant 0 : index
    %6 = vector.load %arg5[%c0_5, %c0_6, %c0_7] : memref<1x32x32xbf16, #tpu.memory_space<vmem>>, vector<1x32x32xbf16>
    %7 = vector.shape_cast %6 : vector<1x32x32xbf16> to vector<32x32xbf16>
    %cst = arith.constant dense<0.000000e+00> : vector<16x32xf32>
    %8 = tpu.matmul %5, %7, %cst {dimension_numbers = #tpu.dot_dimension_numbers<[1], [0], [0], [1], [0, 0, 1, 1], [], []>} : vector<16x32xbf16>, vector<32x32xbf16>, vector<16x32xf32> -> vector<16x32xf32>
    %9 = arith.addf %3, %8 : vector<16x32xf32>
    %c0_8 = arith.constant 0 : index
    %c0_9 = arith.constant 0 : index
    %10 = vector.load %arg8[%c0_8, %c0_9] : memref<16x32xf32, #tpu.memory_space<vmem>>, vector<16x32xf32>
    tpu.vector_store %arg8[%c0_8, %c0_9], %9 {strides = array<i32>} : memref<16x32xf32, #tpu.memory_space<vmem>>, vector<16x32xf32>,
    %c0_i32_10 = arith.constant 0 : i32
    %11 = arith.cmpi eq, %arg3, %c0_i32_10 : i32
    %12 = arith.extui %11 : i1 to i32
    %c0_i32_11 = arith.constant 0 : i32
    %13 = arith.cmpi ne, %12, %c0_i32_11 : i32
    scf.if %13 {
      %c0_12 = arith.constant 0 : index
      %c0_13 = arith.constant 0 : index
      %14 = vector.load %arg8[%c0_12, %c0_13] : memref<16x32xf32, #tpu.memory_space<vmem>>, vector<16x32xf32>
      %c0_14 = arith.constant 0 : index
      %c0_15 = arith.constant 0 : index
      %c0_16 = arith.constant 0 : index
      %15 = vector.load %arg6[%c0_14, %c0_15, %c0_16] : memref<1x1x32xf32, #tpu.memory_space<vmem>>, vector<1x1x32xf32>
      %16 = vector.shape_cast %15 : vector<1x1x32xf32> to vector<1x32xf32>
      %17 = vector.broadcast %16 : vector<1x32xf32> to vector<16x32xf32>
      %18 = arith.addf %14, %17 : vector<16x32xf32>
      %19 = arith.truncf %18 : vector<16x32xf32> to vector<16x32xbf16>
      %c0_17 = arith.constant 0 : index
      %c0_18 = arith.constant 0 : index
      %c0_19 = arith.constant 0 : index
      %20 = vector.load %arg7[%c0_17, %c0_18, %c0_19] : memref<1x16x32xbf16, #tpu.memory_space<vmem>>, vector<1x16x32xbf16>
      %21 = vector.shape_cast %20 : vector<1x16x32xbf16> to vector<16x32xbf16>
      %22 = vector.shape_cast %19 : vector<16x32xbf16> to vector<1x16x32xbf16>
      tpu.vector_store %arg7[%c0_17, %c0_18, %c0_19], %22 {strides = array<i32>} : memref<1x16x32xbf16, #tpu.memory_space<vmem>>, vector<1x16x32xbf16>,
    } else {
    }
    return
  }
  func.func @transform_0(%arg0: i32, %arg1: i32, %arg2: i32, %arg3: i32) -> (i32, i32, i32) {
    %c0_i32 = arith.constant 0 : i32
    return %arg0, %arg1, %arg3 : i32, i32, i32
  }
  func.func @transform_1(%arg0: i32, %arg1: i32, %arg2: i32, %arg3: i32) -> (i32, i32, i32) {
    %c0_i32 = arith.constant 0 : i32
    return %arg0, %arg3, %arg2 : i32, i32, i32
  }
  func.func @transform_2(%arg0: i32, %arg1: i32, %arg2: i32, %arg3: i32) -> (i32, i32, i32) {
    %c0_i32 = arith.constant 0 : i32
    %c0_i32_0 = arith.constant 0 : i32
    return %arg0, %c0_i32, %arg2 : i32, i32, i32
  }
  func.func @transform_3(%arg0: i32, %arg1: i32, %arg2: i32, %arg3: i32) -> (i32, i32, i32) {
    %c0_i32 = arith.constant 0 : i32
    return %arg0, %arg1, %arg2 : i32, i32, i32
  }
}

</mosaic_0001>

<bundles_post_ra>
// kernel: tpu_custom_call.1
= control target key start
LH: loop header
LB: loop body
LE: loop exit
PB: predicated region body
PF: predicated region fallthrough
CT: control target
= control target key end

     0   :  { %8 = vsyncpa [#allocation4], 0  ;;  %s1097_s0 = inlined_call_operand.hbm [shape: bf16[3,16,32], index: 0, kind: input, shape index: {}]   ;;  %s1098_s1 = inlined_call_operand.hbm [shape: bf16[3,32,32], index: 1, kind: input, shape index: {}]   ;;  %s1099_s2 = inlined_call_operand.vmem [shape: f32[3,1,32], index: 2, kind: input, shape index: {}]   ;;  %s1100_s3 = inlined_call_operand.hbm [shape: bf16[3,16,32], index: 3, kind: output, shape index: {}]  }
   0x1   :  { %10 = vsyncpa [#allocation4 + $0x1], 0 }
   0x2   :  { %11 = vsyncpa [#allocation7], 0 }
   0x3   :  { %13 = vsyncpa [#allocation7 + $0x1], 0 }
   0x4   :  { %14 = vsyncpa [#allocation5], 0 }
   0x5   :  { %16 = vsyncpa [#allocation5 + $0x1], 0  ;;  %s854_s12 = smov 0   ;;  %s856_s13 = smov 0  }
   0x6   :  { %s858_s14 = smov 0   ;;  %s860_s15 = smov 0  }
   0x7   :  { %s862_s16 = smov 0   ;;  %s864_s17 = smov 0  }
   0x8 LB: > { %s559_s18 = sadd.s32 4294967295, %s823_s17   ;;  %s560_s19 = sadd.s32 4294967294, %s823_s17   ;;  %s823_s17 = sphi %s864_s17, %s22_s17   ;;  %s819_s16 = sphi %s862_s16, %s1117_s16   ;;  %s815_s15 = sphi %s860_s15, %s1116_s15   ;;  %s811_s14 = sphi %s858_s14, %s1115_s14   ;;  %s807_s13 = sphi %s856_s13, %s1114_s13   ;;  %s803_s12 = sphi %s854_s12, %s1113_s12  }
   0x9   : > { %s48_s20 = sadd.s32 1, %s819_s16  ;;  %s59_s21 = sadd.s32 1, %s811_s14 }
   0xa   : > { %p50_p0 = scmp.ge.s32.totalorder %s48_s20, 3  ;;  %p66_p1 = scmp.ne.s32.totalorder %s811_s14, %s807_s13 }
   0xb   : > { %p67_p2 = scmp.eq.s32.totalorder %s823_s17, 0  ;;  %p72_p3 = scmp.ne.s32.totalorder %s807_s13, %s803_s12 }
   0xc   : > { %s1119_s20 = smov (%p50_p0, %s48_s20), 0  ;;  %p73_p5 = scmp.eq.s32.totalorder %s559_s18, 0 }
   0xd   : > { %p895_p4 = por %p67_p2, %p66_p1  ;;  %s52_s23 = ssub.s32 %s819_s16, %s1119_s20 }
   0xe   : > { %p158_p6 = scmp.eq.s32.totalorder %s559_s18, 2  ;;  %p57_p7 = scmp.eq.s32.totalorder %s52_s23, 0 }
   0xf   : > { %p901_p8 = por %p73_p5, %p72_p3  ;;  %p164_p10 = scmp.eq.s32.totalorder %s560_s19, 2 }
  0x10   : > { %p905_p9 = por %p158_p6, %p66_p1  ;;  %p618_p12 = scmp.lt.s32.totalorder %s823_s17, 3 }
  0x11   : > { %s1104_s24 = scalar_select %p901_p8, 1, 0 }
  0x12   : > { %s1105_s25 = scalar_select %p905_p9, 1, 0 }
  0x13   : > { %s910_s26 = scalar_select %p57_p7, %s811_s14, %s59_s21  }
  0x14   : > { %p912_p11 = por %p164_p10, %p72_p3  ;;  %s918_s28 = sand.u32 1, %s811_s14  }
  0x15   : > { %s563_s29 = sshll.u32 %s918_s28, 3  ;;  %s585_s30 = sshll.u32 %s819_s16, 7 }
  0x16   : > { %s1106_s27 = scalar_select %p912_p11, 1, 0 }
  0x17   : > { %s925_s6 = scalar_lea.hbm %s1097_s0, %s585_s30  ;;  %s188_s7 = scalar_lea.vmem [#allocation3], %s563_s29 }
  0x18   : > { %s198_s8 = sshll.u32 %s188_s7, 4  ;;  %p931_p13 = pnand %p618_p12, %p895_p4  ;;  %s927_s8 = int_to_ptr.vmem [resolvable:$true] %s198_s8 }
  0x19   : > { %s185_s10 = scalar_lea.sflag [#allocation4], %s918_s28  ;;  %s677_s11 = scalar_lea.hbm %s925_s6, 128 }
  0x1a   : > { %p678_p1 = scmp.ne.s32.totalorder %s925_s6, %s677_s11  ;;  %p679_p2 = pneg %p931_p13 }
  0x1b   : > { %s682_s21 = scalar_lea.hbm %s1097_s0, 384  ;;  %p683_p4 = scmp.lt.u32.totalorder %s925_s6, %s1097_s0 }
  0x1c   : > { %p680_p3 = pnand %p679_p2, %p678_p1  ;;  %p684_p6 = scmp.lt.u32.totalorder %s682_s21, %s677_s11 }
  0x1d   : > { %p686_p10 = scmp.lt.u32.totalorder %s677_s11, %s925_s6 }
  0x1e   : > { %p681_p5 = pneg %p680_p3  ;;  %p685_p7 = por %p684_p6, %p683_p4 }
  0x20   : > { %p687_p12 = por %p686_p10, %p685_p7 }
  0x22   : > { %p688_p0 = pnand %p687_p12, %p681_p5 }
  0x24   : > { %691 = shalt.err (!%p688_p0)
}
  0x25   : > { %s692_s29 = scalar_lea.vmem %s927_s8, 128  ;;  %s825_s30 = smov [#allocation3]  }
  0x26   : > { %p693_p1 = scmp.ne.s32.totalorder %s927_s8, %s692_s29  ;;  %s697_s4 = sshll.u32 %s825_s30, 4  ;;  %s698_s4 = int_to_ptr.vmem [resolvable:$false] %s697_s4 }
  0x27   : > { %s699_s5 = scalar_lea.vmem %s698_s4, 256  ;;  %p700_p9 = scmp.lt.s32.totalorder %s927_s8, %s698_s4 }
  0x28   : > { %p695_p3 = pnand %p693_p1, %p679_p2  ;;  %p701_p4 = scmp.lt.s32.totalorder %s699_s5, %s692_s29 }
  0x2a   : > { %p696_p11 = pneg %p695_p3  ;;  %p702_p6 = por %p701_p4, %p700_p9 }
  0x2c   : > { %p703_p7 = pnand %p702_p6, %p696_p11 }
  0x2e   : > { %706 = shalt.err (!%p703_p7)
}
  0x2f   : > { %s826_s7 = smov 64   ;;  %s827_s11 = smov 4  }
  0x30   : > { %610 = dma.hbm_to_vmem [thread:$0]  (!%p931_p13), %s925_s6, 128, %s927_s8, %s185_s10, %s826_s7, %s826_s7, %s827_s11  }
  0x31   : > { %p239_p9 = scmp.lt.s32.totalorder %s823_s17, 4  ;;  %s566_s18 = sshll.u32 %s918_s28, 4 }
  0x32   : > { %s586_s19 = sshll.u32 %s819_s16, 8  ;;  %p1108_p11 = scmp.ge.s32.totalorder %s823_s17, 1 }
  0x33   : > { %s979_s29 = scalar_lea.hbm %s1098_s1, %s586_s19  ;;  %s212_s30 = scalar_lea.vmem [#allocation6], %s566_s18 }
  0x34   : > { %p972_p0 = pnand %p1108_p11, %p239_p9  ;;  %s222_s4 = sshll.u32 %s212_s30, 4  ;;  %s981_s4 = int_to_ptr.vmem [resolvable:$true] %s222_s4 }
  0x35   : > { %s209_s6 = scalar_lea.sflag [#allocation7], %s918_s28  ;;  %s707_s8 = scalar_lea.hbm %s979_s29, 256 }
  0x36   : > { %p708_p5 = scmp.ne.s32.totalorder %s979_s29, %s707_s8  ;;  %s712_s19 = scalar_lea.hbm %s1098_s1, 768 }
  0x37   : > { %p713_p1 = scmp.lt.u32.totalorder %s979_s29, %s1098_s1  ;;  %p714_p3 = scmp.lt.u32.totalorder %s712_s19, %s707_s8 }
  0x38   : > { %p710_p10 = pnand %p708_p5, %p679_p2  ;;  %p716_p6 = scmp.lt.u32.totalorder %s707_s8, %s979_s29 }
  0x39   : > { %p715_p4 = por %p714_p3, %p713_p1 }
  0x3a   : > { %p711_p12 = pneg %p710_p10 }
  0x3b   : > { %p717_p7 = por %p716_p6, %p715_p4 }
  0x3d   : > { %p718_p9 = pnand %p717_p7, %p711_p12 }
  0x3f   : > { %721 = shalt.err (!%p718_p9)
}
  0x40   : > { %s722_s18 = scalar_lea.vmem %s981_s4, 256  ;;  %s828_s30 = smov [#allocation6]  }
  0x41   : > { %p723_p11 = scmp.ne.s32.totalorder %s981_s4, %s722_s18  ;;  %s727_s10 = sshll.u32 %s828_s30, 4  ;;  %s728_s10 = int_to_ptr.vmem [resolvable:$false] %s727_s10 }
  0x42   : > { %s729_s5 = scalar_lea.vmem %s728_s10, 512  ;;  %p730_p8 = scmp.lt.s32.totalorder %s981_s4, %s728_s10 }
  0x43   : > { %p725_p5 = pnand %p723_p11, %p679_p2  ;;  %p731_p1 = scmp.lt.s32.totalorder %s729_s5, %s722_s18 }
  0x45   : > { %p726_p10 = pneg %p725_p5  ;;  %p732_p3 = por %p731_p1, %p730_p8 }
  0x47   : > { %p733_p4 = pnand %p732_p3, %p726_p10 }
  0x49   : > { %736 = shalt.err (!%p733_p4)
}
  0x4a   : > { %613 = dma.hbm_to_vmem [thread:$0]  (!%p931_p13), %s979_s29, 256, %s981_s4, %s209_s6, %s826_s7, %s826_s7, %s827_s11  }
  0x4b   : > { %243 = sbr.rel (%p972_p0) target bundleno = 338 (0x152), region = 32  ;;  %s1015_s8 = sand.u32 (!%p972_p0), 1, %s807_s13  }
  0x4c   : > { %s570_s19 = sshll.u32 (!%p972_p0), %s1015_s8, 3  ;;  %s246_s9 = scalar_lea.sflag (!%p972_p0), [#allocation4], %s1015_s8 }
  0x4d   : > { %s249_s22 = scalar_lea.vmem (!%p972_p0), [#allocation3], %s570_s19  ;;  %p1110_p8 = scmp.ne.s32.totalorder (!%p972_p0), %s1104_s24, 0 }
  0x52   : > { %790 = dma.done.wait (%p1110_p8), %s246_s9, 128  }
  0x53   : > { %792 = vsyncadd (%p1110_p8), %s246_s9, 4294967168  ;;  %s571_s28 = sshll.u32 %s1015_s8, 4  ;;  %s255_s7 = scalar_lea.sflag [#allocation7], %s1015_s8 }
  0x54   : > { %s258_s11 = scalar_lea.vmem [#allocation6], %s571_s28 }
  0x55   : > { %794 = dma.done.wait (%p1110_p8), %s255_s7, 256  }
  0x56   : > { %796 = vsyncadd (%p1110_p8), %s255_s7, 4294967040  ;;  %vm306_vm0 = vcmask 261120   ;;  %v829_v0 = vmov 0.0   ;;  %vm830_vm1 = vmmov 0   ;;  %v674_v1 = vld [vmem:[%s258_s11] sm:$0xff]   ;;  %v675_v2 = vld [vmem:[%s258_s11 + $0x8] sm:$0xff]  }
  0x57   : > { %593 = vmatprep.subr.bf16.mxu0 %v829_v0  ;;  %597 = vmatprep.mubr.msk.bf16.mxu0 %vm830_vm1, %v829_v0  ;;  %307 = vst.msk [vmem:[#allocation2] sm:$0xff] %vm306_vm0, %v829_v0  ;;  %308 = vst.msk [vmem:[#allocation2 + $0x8] sm:$0xff] %vm306_vm0, %v829_v0  ;;  %v676_v3 = vld [vmem:[%s249_s22] sm:$0xff]   ;;  %p294_p13 = scmp.lt.s32.totalorder %s815_s15, 2  ;;  %s589_s6 = sshll.u32 %s815_s15, 7  ;;  %vm405_vm2 = vcmask 257024  }
  0x58   : > { %594 = vmatpush3.bf16.msra.mxu0 %v674_v1  ;;  %s291_s23 = scalar_lea.vmem [#allocation8], %s570_s19  ;;  %s1047_s5 = scalar_lea.hbm %s1100_s3, %s589_s6 }
  0x59   : > { %595 = vmatprep.subr.bf16.mxu0 %v829_v0  ;;  %s295_s24 = scalar_select %p294_p13, %s815_s15, 2 }
  0x5a   : > { %s425_s18 = sshll.u32 %s291_s23, 4  ;;  %s409_s15 = scalar_lea.sflag [#allocation5], %s1015_s8  ;;  %s1049_s18 = int_to_ptr.vmem [resolvable:$true] %s425_s18 }
  0x5b   : > { %s299_s4 = scalar_lea.vmem %s1099_s2, %s295_s24  ;;  %s737_s19 = scalar_lea.vmem %s1049_s18, 128 }
  0x5c   : > { %596 = vmatpush3.bf16.msra.mxu0 %v675_v2  ;;  %v577_v12 = vld [vmem:[%s299_s4] ss:$0 sm:$0xff]  ;;  %p738_p2 = scmp.ne.s32.totalorder %s1049_s18, %s737_s19  ;;  %p1111_p0 = scmp.ne.s32.totalorder %s1105_s25, 0 }
  0x5d   : > { %s831_s9 = smov [#allocation8]  }
  0x5e   : > { %v309_v4 = vld [vmem:[#allocation2] sm:$0xff]  ;;  %v310_v6 = vld [vmem:[#allocation2 + $0x8] sm:$0xff]  ;;  %p739_p12 = pnand %p738_p2, %p1111_p0  ;;  %s741_s22 = sshll.u32 %s831_s9, 4  ;;  %s742_s22 = int_to_ptr.vmem [resolvable:$false] %s741_s22 }
  0x5f   : > { %598 = vmatmul.mubr.msk.bf16.vlgmr.msra.gmra.mrb[0].mxu0 %vm306_vm0, %v676_v3  ;;  %s743_s28 = scalar_lea.vmem %s742_s22, 256  ;;  %p744_p7 = scmp.lt.s32.totalorder %s1049_s18, %s742_s22 }
  0x60   : > { %p740_p6 = pneg %p739_p12  ;;  %p745_p9 = scmp.lt.s32.totalorder %s743_s28, %s737_s19 }
  0x62   : > { %p746_p11 = por %p745_p9, %p744_p7 }
  0x64   : > { %p747_p5 = pnand %p746_p11, %p740_p6 }
 0x132   : > { %v372_v5 = vpop.f32.mrb[0].mxu0 }
 0x133   : > { %v379_v7 = vadd.f32 %v372_v5, %v309_v4  ;;  %v599_v8 = vpop.f32.mrb[1].mxu0 }
 0x134   : > { %v375_v9 = vpop.f32.mrb[2].mxu0 }
 0x135   : > { %381 = vst.msk [vmem:[#allocation2] sm:$0xff] %vm306_vm0, %v379_v7  ;;  %v380_v10 = vadd.f32 %v375_v9, %v310_v6  ;;  %v600_v11 = vpop.f32.mrb[3].mxu0 }
 0x137   : > { %382 = vst.msk [vmem:[#allocation2 + $0x8] sm:$0xff] %vm306_vm0, %v380_v10 }
 0x13c   : > { %v386_v13 = vld [vmem:[#allocation2] sm:$0xff] }
 0x13d   : > { %v395_v14 = vadd.f32 %v577_v12, %v386_v13 }
 0x13e   : > { %v387_v15 = vld [vmem:[#allocation2 + $0x8] sm:$0xff] }
 0x13f   : > { %v396_v16 = vadd.f32 %v577_v12, %v387_v15  ;;  %v587_v17 = vpack.c.bf16 %v395_v14, %v395_v14 }
 0x141   : > { %v588_v18 = vpack.c.bf16 %v396_v16, %v396_v16  ;;  %406 = vst.msk [vmem:[%s291_s23] sm:$0xf] %vm405_vm2, %v587_v17 }
 0x143   : > { %407 = vst.msk [vmem:[%s291_s23 + $0x4] sm:$0xf] %vm405_vm2, %v588_v18 }
 0x144   : > { %750 = shalt.err (!%p747_p5)
}
 0x145   : > { %s751_s7 = scalar_lea.hbm %s1047_s5, 128  ;;  %s755_s21 = scalar_lea.hbm %s1100_s3, 384 }
 0x146   : > { %p752_p10 = scmp.ne.s32.totalorder %s1047_s5, %s751_s7  ;;  %p756_p4 = scmp.lt.u32.totalorder %s1047_s5, %s1100_s3 }
 0x147   : > { %p757_p8 = scmp.lt.u32.totalorder %s755_s21, %s751_s7  ;;  %p759_p2 = scmp.lt.u32.totalorder %s751_s7, %s1047_s5 }
 0x148   : > { %p753_p1 = pnand %p752_p10, %p1111_p0 }
 0x149   : > { %p758_p13 = por %p757_p8, %p756_p4 }
 0x14a   : > { %p754_p3 = pneg %p753_p1 }
 0x14b   : > { %p760_p12 = por %p759_p2, %p758_p13 }
 0x14d   : > { %p761_p6 = pnand %p760_p12, %p754_p3 }
 0x14f   : > { %764 = shalt.err (!%p761_p6)
}
 0x150   : > { %s832_s6 = smov 64   ;;  %s833_s23 = smov 4  }
 0x151   : > { %605 = dma.vmem_to_hbm [thread:$0]  (%p1111_p0), %s1049_s18, 128, %s1047_s5, %s409_s15, %s832_s6, %s832_s6, %s833_s23  }
 0x152 PF: > { %p619_p7 = scmp.ge.s32.totalorder %s823_s17, 2  ;;  %s440_s30 = sand.u32 1, %s803_s12  }
 0x153   : > { %p1112_p9 = scmp.ne.s32.totalorder %s1106_s27, 0  ;;  %s441_s10 = scalar_lea.sflag [#allocation5], %s440_s30 }
 0x155   : > { %p615_p11 = pnand %p619_p7, %p1112_p9 }
 0x157   : > { %798 = dma.done.wait (!%p615_p11), %s441_s10, 128  }
 0x158   : > { %800 = vsyncadd (!%p615_p11), %s441_s10, 4294967168  ;;  %s22_s17 = sadd.s32 1, %s823_s17   ;;  %s1113_s12 = smov %s807_s13 }
 0x159   : > { %p19_p5 = scmp.ge.s32.totalorder %s22_s17, 5   ;;  %s1114_s13 = smov %s811_s14 }
 0x15a   : > { %s1115_s14 = smov %s910_s26  ;;  %s1116_s15 = smov %s819_s16 }
 0x15b   : > { %s1117_s16 = smov %s1119_s20  ;;  %21 = sbr.rel (!%p19_p5) target bundleno = 8 (0x8), region = 101 }
 0x162   :  { %446 = vsyncpa [#allocation4], 1 }
 0x163   :  { %448 = vsyncpa [#allocation4 + $0x1], 1 }
 0x164   :  { %449 = vsyncpa [#allocation7], 1 }
 0x165   :  { %451 = vsyncpa [#allocation7 + $0x1], 1 }
 0x166   :  { %452 = vsyncpa [#allocation5], 1 }
 0x167   :  { %454 = vsyncpa [#allocation5 + $0x1], 1 }

</bundles_post_ra>
